<compile_context>
chip_gen: v7x
topology: tpu7x:2x2x1
jax: 0.10.0
libtpu: 0.0.40
codegen_flags: <defaults>
</compile_context>

<pallas_src>
import functools

import jax
import jax.numpy as jnp
from jax.experimental import pallas as pl
from jax.experimental.pallas import tpu as pltpu


# --------------------------------------------------------------------------
# Kernel 1: fused encoder (1x1 conv + bias + ReLU) + decoder (1x1 conv + bias)
# channels-first blocks: x [1, Cin, TP] -> masks [1, Cout, TP]
# --------------------------------------------------------------------------
def enc_dec_kernel(x_ref, w1t_ref, b1_ref, w2t_ref, b2_ref, o_ref):
    x = x_ref[0].astype(jnp.float32)                                   # [Cin, TP]
    h = jnp.dot(w1t_ref[...], x, preferred_element_type=jnp.float32)   # [Cmid, TP]
    h = jnp.maximum(h + b1_ref[...], 0.0)                              # bias + ReLU
    o = jnp.dot(w2t_ref[...], h, preferred_element_type=jnp.float32)   # [Cout, TP]
    o_ref[0] = (o + b2_ref[...]).astype(o_ref.dtype)


def enc_dec(x3, w1t, b1c, w2t, b2c, *, max_pixel_tile=2048):
    """x3: [B, Cin, HW] -> [B, Cout, HW] (channels-first, pixels on lanes)."""
    B, Cin, HW = x3.shape
    Cmid = w1t.shape[0]
    Cout = w2t.shape[0]
    if HW % 128 == 0:
        tp = min(max_pixel_tile, HW)          # large, lane-aligned pixel tile
    else:
        # TODO(synk): pad HW to a multiple of 128 for large unaligned shapes;
        # a single full-width block keeps correctness for small ones.
        tp = HW
    grid = (B, pl.cdiv(HW, tp))
    return pl.pallas_call(
        enc_dec_kernel,
        out_shape=jax.ShapeDtypeStruct((B, Cout, HW), jnp.float32),
        grid_spec=pltpu.PrefetchScalarGridSpec(
            num_scalar_prefetch=0,
            grid=grid,
            in_specs=[
                pl.BlockSpec((1, Cin, tp), lambda b, p: (b, 0, p)),
                pl.BlockSpec((Cmid, Cin), lambda b, p: (0, 0)),
                pl.BlockSpec((Cmid, 1), lambda b, p: (0, 0)),
                pl.BlockSpec((Cout, Cmid), lambda b, p: (0, 0)),
                pl.BlockSpec((Cout, 1), lambda b, p: (0, 0)),
            ],
            out_specs=pl.BlockSpec((1, Cout, tp), lambda b, p: (b, 0, p)),
        ),
        compiler_params=pltpu.CompilerParams(
            dimension_semantics=("parallel", "parallel")),
    )(x3, w1t, b1c, w2t, b2c)


# --------------------------------------------------------------------------
# Kernel 2: top-k (largest values, duplicates kept) + mean over spatial axis
#   input  rows: [B*num_classes, H*W]  ->  output: [B*num_classes, 1]
# --------------------------------------------------------------------------
def topk_mean_kernel(m_ref, o_ref, *, k):
    vals = m_ref[...].astype(jnp.float32)                    # [RT, N]
    rt = vals.shape[0]
    neg = jnp.float32(-jnp.inf)
    acc = jnp.zeros((rt, 1), jnp.float32)
    remaining = jnp.full((rt, 1), jnp.float32(k))
    # Peel off the current row maximum k times.  All duplicates of the max are
    # removed at once and credited min(count, remaining) times, which equals
    # the sum of the k largest values (torch.topk keeps duplicates).  Only one
    # max + one sum cross-lane reduction per step; no resident int32 iota.
    for _ in range(k):
        m = jnp.max(vals, axis=1, keepdims=True)             # [RT, 1]
        eq = vals == m
        cnt = jnp.sum(eq.astype(jnp.float32), axis=1, keepdims=True)
        take = jnp.minimum(cnt, remaining)
        acc = acc + jnp.where(take > 0, m * take, 0.0)       # guard -inf * 0
        remaining = remaining - take
        vals = jnp.where(eq, neg, vals)
    o_ref[...] = (acc * jnp.float32(1.0 / k)).astype(o_ref.dtype)


def topk_mean(rows, k, *, row_tile=8):
    R, N = rows.shape
    assert k <= N, "topk requires k <= H*W"
    rt = min(row_tile, R)
    grid = (pl.cdiv(R, rt),)
    # TODO(synk): for very large H*W, additionally tile N with a streaming
    # partial-top-k merge (or fuse this reduction into kernel 1).
    return pl.pallas_call(
        functools.partial(topk_mean_kernel, k=k),
        out_shape=jax.ShapeDtypeStruct((R, 1), jnp.float32),
        grid_spec=pltpu.PrefetchScalarGridSpec(
            num_scalar_prefetch=0,
            grid=grid,
            in_specs=[pl.BlockSpec((rt, N), lambda i: (i, 0))],
            out_specs=pl.BlockSpec((rt, 1), lambda i: (i, 0)),
        ),
        compiler_params=pltpu.CompilerParams(dimension_semantics=("parallel",)),
    )(rows)


# --------------------------------------------------------------------------
# Wrapper reproducing MultiTaskModel.forward (no whole-tensor transposes)
# --------------------------------------------------------------------------
def multi_task_forward(x_nchw, params, topk=10):
    w1, b1, w2, b2 = params
    B, Cin, H, W = x_nchw.shape
    Cmid = w1.shape[1]
    Cout = w2.shape[1]
    HW = H * W

    x3 = x_nchw.reshape(B, Cin, HW)            # free reshape, stays channels-first
    w1t = w1.T                                  # [Cmid, Cin]
    w2t = w2.T                                  # [Cout, Cmid]
    b1c = b1.reshape(Cmid, 1)
    b2c = b2.reshape(Cout, 1)

    masks3 = enc_dec(x3, w1t, b1c, w2t, b2c)    # [B, Cout, HW]
    masks = masks3.reshape(B, Cout, H, W)       # free reshape (NCHW)

    rows = masks3.reshape(B * Cout, HW)         # masks.view(B, C, -1), free
    logits = topk_mean(rows, topk).reshape(B, Cout)
    return logits, masks


# --------------------------------------------------------------------------
# Pure-JAX reference (for correctness check)
# --------------------------------------------------------------------------
def ref_forward(x_nchw, params, topk=10):
    w1, b1, w2, b2 = params
    h = jnp.einsum("bchw,cd->bdhw", x_nchw, w1) + b1.reshape(1, -1, 1, 1)
    h = jnp.maximum(h, 0.0)
    masks = jnp.einsum("bchw,cd->bdhw", h, w2) + b2.reshape(1, -1, 1, 1)
    flat = masks.reshape(masks.shape[0], masks.shape[1], -1)
    logits = jax.lax.top_k(flat, topk)[0].mean(axis=2)
    return logits, masks


if __name__ == "__main__":
    key = jax.random.PRNGKey(0)
    B, Cin, H, W = 2, 4, 16, 16
    Cmid, num_classes, topk = 8, 4, 10

    k1, k2, k3, k4, k5 = jax.random.split(key, 5)
    x = jax.random.normal(k1, (B, Cin, H, W), jnp.float32)
    w1 = jax.random.normal(k2, (Cin, Cmid), jnp.float32) * 0.5
    b1 = jax.random.normal(k3, (1, Cmid), jnp.float32) * 0.1
    w2 = jax.random.normal(k4, (Cmid, num_classes), jnp.float32) * 0.5
    b2 = jax.random.normal(k5, (1, num_classes), jnp.float32) * 0.1
    params = (w1, b1, w2, b2)

    logits, masks = multi_task_forward(x, params, topk=topk)
    jax.block_until_ready((logits, masks))

    ref_logits, ref_masks = ref_forward(x, params, topk=topk)
    assert masks.shape == (B, num_classes, H, W)
    assert logits.shape == (B, num_classes)
    assert jnp.allclose(masks, ref_masks, atol=1e-4, rtol=1e-4)
    assert jnp.allclose(logits, ref_logits, atol=1e-4, rtol=1e-4)

    print("KERNEL_OK")
</pallas_src>

<mosaic_0001>
module attributes {stable_mosaic.version = 11 : i64} {
  func.func @enc_dec_kernel(%arg0: i32, %arg1: i32, %arg2: memref<1x4x256xf32, #tpu.memory_space<vmem>>, %arg3: memref<8x4xf32, #tpu.memory_space<vmem>>, %arg4: memref<8x1xf32, #tpu.memory_space<vmem>>, %arg5: memref<4x8xf32, #tpu.memory_space<vmem>>, %arg6: memref<4x1xf32, #tpu.memory_space<vmem>>, %arg7: memref<1x4x256xf32, #tpu.memory_space<vmem>>) attributes {dimension_semantics = [#tpu.dimension_semantics<parallel>, #tpu.dimension_semantics<parallel>], iteration_bounds = array<i64: 2, 1>, scalar_prefetch = 0 : i64, scratch_operands = 0 : i64, tpu.core_type = #tpu.core_type<tc>, window_params = [{transform_indices = @transform_0, window_bounds = array<i64: 1, 4, 256>}, {pipeline_mode = #tpu.pipeline_mode<synchronous>, transform_indices = @transform_1, window_bounds = array<i64: 8, 4>}, {pipeline_mode = #tpu.pipeline_mode<synchronous>, transform_indices = @transform_2, window_bounds = array<i64: 8, 1>}, {pipeline_mode = #tpu.pipeline_mode<synchronous>, transform_indices = @transform_3, window_bounds = array<i64: 4, 8>}, {pipeline_mode = #tpu.pipeline_mode<synchronous>, transform_indices = @transform_4, window_bounds = array<i64: 4, 1>}, {transform_indices = @transform_5, window_bounds = array<i64: 1, 4, 256>}]} {
    %c0 = arith.constant 0 : index
    %c0_0 = arith.constant 0 : index
    %c0_1 = arith.constant 0 : index
    %0 = vector.load %arg2[%c0, %c0_0, %c0_1] : memref<1x4x256xf32, #tpu.memory_space<vmem>>, vector<1x4x256xf32>
    %1 = vector.shape_cast %0 : vector<1x4x256xf32> to vector<4x256xf32>
    %c0_2 = arith.constant 0 : index
    %c0_3 = arith.constant 0 : index
    %2 = vector.load %arg3[%c0_2, %c0_3] : memref<8x4xf32, #tpu.memory_space<vmem>>, vector<8x4xf32>
    %cst = arith.constant dense<0.000000e+00> : vector<8x256xf32>
    %3 = tpu.matmul %2, %1, %cst {dimension_numbers = #tpu.dot_dimension_numbers<[1], [0], [0], [1], [0, 0, 1, 1], [], []>} : vector<8x4xf32>, vector<4x256xf32>, vector<8x256xf32> -> vector<8x256xf32>
    %c0_4 = arith.constant 0 : index
    %c0_5 = arith.constant 0 : index
    %4 = vector.load %arg4[%c0_4, %c0_5] : memref<8x1xf32, #tpu.memory_space<vmem>>, vector<8x1xf32>
    %5 = vector.broadcast %4 : vector<8x1xf32> to vector<8x256xf32>
    %6 = arith.addf %3, %5 : vector<8x256xf32>
    %cst_6 = arith.constant 0.000000e+00 : f32
    %7 = vector.broadcast %cst_6 : f32 to vector<8x256xf32>
    %8 = arith.maximumf %6, %7 : vector<8x256xf32>
    %c0_7 = arith.constant 0 : index
    %c0_8 = arith.constant 0 : index
    %9 = vector.load %arg5[%c0_7, %c0_8] : memref<4x8xf32, #tpu.memory_space<vmem>>, vector<4x8xf32>
    %cst_9 = arith.constant dense<0.000000e+00> : vector<4x256xf32>
    %10 = tpu.matmul %9, %8, %cst_9 {dimension_numbers = #tpu.dot_dimension_numbers<[1], [0], [0], [1], [0, 0, 1, 1], [], []>} : vector<4x8xf32>, vector<8x256xf32>, vector<4x256xf32> -> vector<4x256xf32>
    %c0_10 = arith.constant 0 : index
    %c0_11 = arith.constant 0 : index
    %11 = vector.load %arg6[%c0_10, %c0_11] : memref<4x1xf32, #tpu.memory_space<vmem>>, vector<4x1xf32>
    %12 = vector.broadcast %11 : vector<4x1xf32> to vector<4x256xf32>
    %13 = arith.addf %10, %12 : vector<4x256xf32>
    %c0_12 = arith.constant 0 : index
    %c0_13 = arith.constant 0 : index
    %c0_14 = arith.constant 0 : index
    %14 = vector.load %arg7[%c0_12, %c0_13, %c0_14] : memref<1x4x256xf32, #tpu.memory_space<vmem>>, vector<1x4x256xf32>
    %15 = vector.shape_cast %14 : vector<1x4x256xf32> to vector<4x256xf32>
    %16 = vector.shape_cast %13 : vector<4x256xf32> to vector<1x4x256xf32>
    tpu.vector_store %arg7[%c0_12, %c0_13, %c0_14], %16 {strides = array<i32>} : memref<1x4x256xf32, #tpu.memory_space<vmem>>, vector<1x4x256xf32>,
    return
  }
  func.func @transform_0(%arg0: i32, %arg1: i32) -> (i32, i32, i32) {
    %c0_i32 = arith.constant 0 : i32
    %c0_i32_0 = arith.constant 0 : i32
    return %arg0, %c0_i32, %arg1 : i32, i32, i32
  }
  func.func @transform_1(%arg0: i32, %arg1: i32) -> (i32, i32) {
    %c0_i32 = arith.constant 0 : i32
    %c0_i32_0 = arith.constant 0 : i32
    %c0_i32_1 = arith.constant 0 : i32
    return %c0_i32, %c0_i32_0 : i32, i32
  }
  func.func @transform_2(%arg0: i32, %arg1: i32) -> (i32, i32) {
    %c0_i32 = arith.constant 0 : i32
    %c0_i32_0 = arith.constant 0 : i32
    %c0_i32_1 = arith.constant 0 : i32
    return %c0_i32, %c0_i32_0 : i32, i32
  }
  func.func @transform_3(%arg0: i32, %arg1: i32) -> (i32, i32) {
    %c0_i32 = arith.constant 0 : i32
    %c0_i32_0 = arith.constant 0 : i32
    %c0_i32_1 = arith.constant 0 : i32
    return %c0_i32, %c0_i32_0 : i32, i32
  }
  func.func @transform_4(%arg0: i32, %arg1: i32) -> (i32, i32) {
    %c0_i32 = arith.constant 0 : i32
    %c0_i32_0 = arith.constant 0 : i32
    %c0_i32_1 = arith.constant 0 : i32
    return %c0_i32, %c0_i32_0 : i32, i32
  }
  func.func @transform_5(%arg0: i32, %arg1: i32) -> (i32, i32, i32) {
    %c0_i32 = arith.constant 0 : i32
    %c0_i32_0 = arith.constant 0 : i32
    return %arg0, %c0_i32, %arg1 : i32, i32, i32
  }
}

</mosaic_0001>

<bundles_post_ra>
// kernel: tpu_custom_call.1
= control target key start
LH: loop header
LB: loop body
LE: loop exit
PB: predicated region body
PF: predicated region fallthrough
CT: control target
= control target key end

     0   :  { %10 = vsyncpa [#allocation3], 0  ;;  %s841_s0 = inlined_call_operand.vmem [shape: f32[2,4,256], index: 0, kind: input, shape index: {}]   ;;  %s842_s1 = inlined_call_operand.vmem [shape: f32[8,4], index: 1, kind: input, shape index: {}]   ;;  %s843_s2 = inlined_call_operand.vmem [shape: f32[8,1], index: 2, kind: input, shape index: {}]   ;;  %s844_s3 = inlined_call_operand.vmem [shape: f32[4,8], index: 3, kind: input, shape index: {}]   ;;  %s845_s4 = inlined_call_operand.vmem [shape: f32[4,1], index: 4, kind: input, shape index: {}]   ;;  %s846_s5 = inlined_call_operand.hbm [shape: f32[2,4,256], index: 5, kind: output, shape index: {}]  }
   0x1   :  { %12 = vsyncpa [#allocation3 + $0x1], 0  ;;  %s717_s18 = smov 0   ;;  %s719_s19 = smov 0  }
   0x2   :  { %s721_s20 = smov 0   ;;  %s723_s21 = smov 0  }
   0x3   :  { %s725_s22 = smov 0   ;;  %s727_s23 = smov 0  }
   0x4 LB: > { %s526_s24 = sadd.s32 4294967295, %s682_s23   ;;  %s527_s25 = sadd.s32 4294967294, %s682_s23   ;;  %s682_s23 = sphi %s727_s23, %s18_s23   ;;  %s678_s22 = sphi %s725_s22, %s853_s22   ;;  %s674_s21 = sphi %s723_s21, %s852_s21   ;;  %s670_s20 = sphi %s721_s20, %s851_s20   ;;  %s666_s19 = sphi %s719_s19, %s850_s19   ;;  %s662_s18 = sphi %s717_s18, %s849_s18  }
   0x5   : > { %s30_s26 = sadd.s32 1, %s678_s22  ;;  %s151_s27 = sadd.s32 1, %s670_s20 }
   0x6   : > { %p32_p0 = scmp.ge.s32.totalorder %s30_s26, 2  ;;  %p161_p1 = scmp.ne.s32.totalorder %s670_s20, %s666_s19 }
   0x7   : > { %p162_p2 = scmp.eq.s32.totalorder %s526_s24, 1  ;;  %p167_p3 = scmp.ne.s32.totalorder %s666_s19, %s662_s18 }
   0x8   : > { %s855_s26 = smov (%p32_p0, %s30_s26), 0  ;;  %p168_p5 = scmp.eq.s32.totalorder %s527_s25, 1 }
   0x9   : > { %p757_p4 = por %p162_p2, %p161_p1  ;;  %s146_s29 = ssub.s32 %s678_s22, %s855_s26 }
   0xa   : > { %p530_p6 = scmp.ge.s32.totalorder %s682_s23, 1  ;;  %p149_p7 = scmp.eq.s32.totalorder %s146_s29, 0 }
   0xb   : > { %p764_p8 = por %p168_p5, %p167_p3  ;;  %p211_p9 = scmp.lt.s32.totalorder %s682_s23, 3 }
   0xc   : > { %s770_s6 = scalar_select %p149_p7, %s670_s20, %s151_s27  }
   0xd   : > { %p212_p10 = pnand %p530_p6, %p211_p9 }
   0xe   : > { %p244_p11 = scmp.lt.s32.totalorder (!%p212_p10), %s674_s21, 1  ;;  %v684_v0 = vmov (!%p212_p10), 0.0   ;;  %v685_v1 = vmov (!%p212_p10), 0   ;;  %v256_v2 = vld [vmem:[%s843_s2] sm:$0xff] (!%p212_p10)  ;;  %vm268_vm0 = vcmask (!%p212_p10), 1043456   ;;  %vm264_vm1 = vcmask (!%p212_p10), 31744  }
   0xf   : > { %215 = sbr.rel (%p212_p10) target bundleno = 481 (0x1e1), region = 40  ;;  %337 = vmatprep.mubr.f32.mxu0 (!%p212_p10), %v684_v0  ;;  %602 = vset.pattern.permute.xlu0 (!%p212_p10), %v685_v1  ;;  %v347_v3 = vld [vmem:[%s845_s4] sm:$0xf] (!%p212_p10)  ;;  %vm353_vm2 = vcmask (!%p212_p10), 64512   ;;  %s240_s27 = sand.u32 (!%p212_p10), 1, %s666_s19  }
  0x10   : > { %259 = vperm.xlu0 (!%p212_p10), %602, %v256_v2   ;;  %421 = vmatprep.mubr.f32.mxu1 (!%p212_p10), %v684_v0  ;;  %v255_v6 = vld [vmem:[%s842_s1] sm:$0xff] (!%p212_p10)  ;;  %s531_s29 = sshll.u32 (!%p212_p10), %s240_s27, 3  ;;  %s544_s7 = sshll.u32 (!%p212_p10), %s674_s21, 7 }
  0x11   : > { %v346_v14 = vld [vmem:[%s844_s3] sm:$0xf] (!%p212_p10)  ;;  %s242_s8 = scalar_lea.vmem (!%p212_p10), [#allocation2], %s531_s29  ;;  %s434_s13 = scalar_lea.sflag (!%p212_p10), [#allocation3], %s240_s27 }
  0x14   : > { %350 = vperm.xlu0 (!%p212_p10), %602, %v347_v3  }
  0x16   : > { %s245_s9 = scalar_select %p244_p11, %s674_s21, 1 }
  0x17   : > { %s686_s21 = smov [#allocation2]  }
  0x18   : > { %s543_s12 = sshll.u32 %s245_s9, 3  ;;  %s450_s9 = sshll.u32 %s242_s8, 4  ;;  %s796_s9 = int_to_ptr.vmem [resolvable:$true] %s450_s9 }
  0x19   : > { %s251_s15 = scalar_lea.vmem %s841_s0, %s543_s12  ;;  %s794_s12 = scalar_lea.hbm %s846_s5, %s544_s7 }
  0x1a   : > { %v254_v4 = vld [vmem:[%s251_s15] sm:$0xff]  ;;  %s604_s14 = scalar_lea.vmem %s796_s9, 128  ;;  %s608_s15 = sshll.u32 %s686_s21, 4  ;;  %s609_s15 = int_to_ptr.vmem [resolvable:$false] %s608_s15 }
  0x1b   : > { %v263_v5 = vcombine.high %v254_v4, %v254_v4  ;;  %p605_p12 = scmp.ne.s32.totalorder %s796_s9, %s604_s14  ;;  %s610_s16 = scalar_lea.vmem %s609_s15, 256 }
  0x1c   : > { %p611_p1 = scmp.lt.s32.totalorder %s796_s9, %s609_s15  ;;  %p612_p2 = scmp.lt.s32.totalorder %s610_s16, %s604_s14 }
  0x1d   : > { %534 = vmatprep.subr.msk.mxu0 %vm268_vm0, %v263_v5  ;;  %p606_p13 = pnand %p605_p12, %p757_p4 }
  0x1e   : > { %535 = vmatpush1.msk.msra.mxu0 %vm268_vm0, %v254_v4  ;;  %p613_p3 = por %p612_p2, %p611_p1 }
  0x1f   : > { %536 = vmatmul.mubr.msk.f32.vlgmr.msra.gmra.mrb[0].mxu0 %vm264_vm1, %v255_v6  ;;  %p607_p0 = pneg %p606_p13 }
  0x21   : > { %p614_p5 = pnand %p613_p3, %p607_p0 }
  0x8f   : > { %v260_v7 = vpop.permute.xlu0 %259 }
  0x93   : > { %v351_v15 = vpop.permute.xlu0 %350 }
  0xf2   : > { %v339_v8 = vpop.f32.mrb[0].mxu0 }
  0xf3   : > { %v340_v9 = vadd.f32 %v339_v8, %v260_v7  ;;  %v341_v10 = vpop.f32.mrb[1].mxu0 }
  0xf4   : > { %v342_v11 = vadd.f32 %v341_v10, %v260_v7 }
  0xf5   : > { %v344_v13 = vmax.f32 %v340_v9, 0.0 }
  0xf6   : > { %v345_v12 = vmax.f32 %v342_v11, 0.0 }
  0xf8   : > { %357 = vmatprep.subr.mxu1 %v345_v12 }
  0xf9   : > { %358 = vmatpush1.msra.mxu1 %v344_v13 }
  0xfa   : > { %537 = vmatmul.mubr.msk.f32.vlgmr.msra.gmra.mrb[0].mxu1 %vm353_vm2, %v346_v14 }
 0x1cd   : > { %v423_v16 = vpop.f32.mrb[0].mxu1 }
 0x1ce   : > { %v424_v17 = vadd.f32 %v423_v16, %v351_v15  ;;  %v425_v18 = vpop.f32.mrb[1].mxu1 }
 0x1cf   : > { %v426_v19 = vadd.f32 %v425_v18, %v351_v15 }
 0x1d1   : > { %v430_v20 = vcombine.low %v424_v17, %v426_v19 }
 0x1d3   : > { %432 = vst [vmem:[%s242_s8] sm:$0xff] %v430_v20 }
 0x1d4   : > { %617 = shalt.err (!%p614_p5)
}
 0x1d5   : > { %s618_s17 = scalar_lea.hbm %s794_s12, 128  ;;  %s622_s27 = scalar_lea.hbm %s846_s5, 256 }
 0x1d6   : > { %p619_p6 = scmp.ne.s32.totalorder %s794_s12, %s618_s17  ;;  %p623_p10 = scmp.lt.u32.totalorder %s794_s12, %s846_s5 }
 0x1d7   : > { %p624_p11 = scmp.lt.u32.totalorder %s622_s27, %s618_s17  ;;  %p626_p13 = scmp.lt.u32.totalorder %s618_s17, %s794_s12 }
 0x1d8   : > { %p620_p7 = pnand %p619_p6, %p757_p4 }
 0x1d9   : > { %p625_p12 = por %p624_p11, %p623_p10 }
 0x1da   : > { %p621_p9 = pneg %p620_p7 }
 0x1db   : > { %p627_p0 = por %p626_p13, %p625_p12 }
 0x1dd   : > { %p628_p1 = pnand %p627_p0, %p621_p9 }
 0x1df   : > { %631 = shalt.err (!%p628_p1)
}
 0x1e0   : > { %545 = dma.vmem_to_hbm [thread:$0]  (%p757_p4), %s796_s9, 128, %s794_s12, %s434_s13  }
 0x1e1 PF: > { %p551_p2 = scmp.ge.s32.totalorder %s682_s23, 2  ;;  %s462_s8 = sand.u32 1, %s662_s18  }
 0x1e2   : > { %s463_s10 = scalar_lea.sflag [#allocation3], %s462_s8 }
 0x1e3   : > { %p548_p3 = pnand %p551_p2, %p764_p8 }
 0x1e5   : > { %657 = dma.done.wait (!%p548_p3), %s463_s10, 128  }
 0x1e6   : > { %659 = vsyncadd (!%p548_p3), %s463_s10, 4294967168  ;;  %s18_s23 = sadd.s32 1, %s682_s23   ;;  %s849_s18 = smov %s666_s19 }
 0x1e7   : > { %p15_p5 = scmp.ge.s32.totalorder %s18_s23, 4   ;;  %s850_s19 = smov %s670_s20 }
 0x1e8   : > { %s851_s20 = smov %s770_s6  ;;  %s852_s21 = smov %s678_s22 }
 0x1e9   : > { %s853_s22 = smov %s855_s26  ;;  %17 = sbr.rel (!%p15_p5) target bundleno = 4 (0x4), region = 75 }
 0x1f0   :  { %468 = vsyncpa [#allocation3], 1 }
 0x1f1   :  { %470 = vsyncpa [#allocation3 + $0x1], 1 }

</bundles_post_ra>
